<compile_context>
chip_gen: v5e
topology: v5e:2x2
jax: 0.10.0
libtpu: 0.0.40
codegen_flags: <defaults>
</compile_context>

<pallas_src>
import functools

import jax
import jax.numpy as jnp
from jax.experimental import pallas as pl
from jax.experimental.pallas import tpu as pltpu

# Small stand-ins for the real sizes (features=2048, fmap_size=7); the kernel
# is size-generic as long as C % tile_c == 0 and tile_c % 8 == 0.
FEATURES = 128
FMAP = 7
P = FMAP * FMAP          # 49
NUM_CLASSES = 2


def _bcnn_kernel(xt_ref, xf_ref, w_ref, b_ref, o_ref, acc_ref, nrm_ref, *, inv_p):
    # xt_ref : (1, TILE_C, P_pad)  current row-tile of this sample's feature map
    # xf_ref : (1, C, P_pad)       full feature map (resident across C tiles)
    # w_ref  : (K, TILE_C, C)      fc-weight slice for this C tile (bf16 or f32)
    # b_ref  : (1, K)              fc bias
    # o_ref  : (1, 1, K)           logits for this sample
    # acc_ref: (1, K) f32 scratch  un-normalized logit accumulator
    # nrm_ref: (1, 1) f32 scratch  squared-L2-norm accumulator
    c = pl.program_id(1)
    num_c = pl.num_programs(1)

    @pl.when(c == 0)
    def _init():
        acc_ref[...] = jnp.zeros_like(acc_ref)
        nrm_ref[...] = jnp.zeros_like(nrm_ref)

    x_tile = xt_ref[0].astype(jnp.float32)       # (TILE_C, P_pad)
    x_full = xf_ref[0].astype(jnp.float32)       # (C, P_pad)

    # --- bilinear pooling tile: contract shared last (spatial) dim on the MXU.
    g = jax.lax.dot_general(
        x_tile, x_full, (((1,), (1,)), ((), ())),
        preferred_element_type=jnp.float32) * inv_p          # (TILE_C, C)

    # --- sqrt(x + 1e-5) (backbone output is post-ReLU, so g >= 0, no NaN).
    g = jnp.sqrt(g + 1e-5)

    # --- partial squared L2 norm of the flattened bilinear vector.
    sq = jnp.sum(g * g, axis=1, keepdims=True)               # (TILE_C, 1)
    nrm_ref[...] += jnp.sum(sq, axis=0, keepdims=True)       # (1, 1)

    # --- dropout: identity in eval mode.
    # --- partial (un-normalized) fc logits.  K is tiny & static; never
    #     materialize a (K, TILE_C, C) broadcast intermediate.
    num_k = w_ref.shape[0]
    lane = jax.lax.broadcasted_iota(jnp.int32, (1, num_k), 1)
    contrib = jnp.zeros((1, num_k), jnp.float32)
    for k in range(num_k):
        wk = w_ref[k].astype(jnp.float32)                    # (TILE_C, C)
        pk = jnp.sum(g * wk, axis=1, keepdims=True)          # (TILE_C, 1)
        pk = jnp.sum(pk, axis=0, keepdims=True)              # (1, 1)
        contrib = contrib + jnp.where(lane == k, pk, 0.0)    # place in lane k
    acc_ref[...] += contrib

    # --- last tile: apply deferred L2 normalization + bias, write logits.
    @pl.when(c == num_c - 1)
    def _finalize():
        norm = jnp.maximum(jnp.sqrt(nrm_ref[...]), 1e-12)    # (1, 1)
        logits = acc_ref[...] / norm + b_ref[...].astype(jnp.float32)
        o_ref[0] = logits.astype(o_ref.dtype)


def bcnn_forward(x_feat, w, b, *, tile_c=256):
    """x_feat: (N, C, P) f32, w: (K, C, C) (f32 or bf16), b: (K,) -> (N, K) f32."""
    N, C, Pp = x_feat.shape
    K = w.shape[0]
    tile_c = min(tile_c, C)
    assert C % tile_c == 0 and tile_c % 8 == 0, (C, tile_c)

    # Zero-pad the spatial dim to a lane-aligned width (doesn't change x @ x^T).
    p_pad = pl.cdiv(Pp, 128) * 128
    if p_pad != Pp:
        x_feat = jnp.pad(x_feat, ((0, 0), (0, 0), (0, p_pad - Pp)))

    b2 = b.reshape(1, K).astype(jnp.float32)
    kernel = functools.partial(_bcnn_kernel, inv_p=1.0 / float(Pp))

    out = pl.pallas_call(
        kernel,
        out_shape=jax.ShapeDtypeStruct((N, 1, K), jnp.float32),
        grid_spec=pltpu.PrefetchScalarGridSpec(
            num_scalar_prefetch=0,
            grid=(N, C // tile_c),
            in_specs=[
                pl.BlockSpec((1, tile_c, p_pad), lambda n, c: (n, c, 0)),  # x tile
                pl.BlockSpec((1, C, p_pad), lambda n, c: (n, 0, 0)),       # x full
                pl.BlockSpec((K, tile_c, C), lambda n, c: (0, c, 0)),      # W slice
                pl.BlockSpec((1, K), lambda n, c: (0, 0)),                 # bias
            ],
            out_specs=pl.BlockSpec((1, 1, K), lambda n, c: (n, 0, 0)),
            scratch_shapes=[
                pltpu.VMEM((1, K), jnp.float32),   # logit accumulator
                pltpu.VMEM((1, 1), jnp.float32),   # squared-norm accumulator
            ],
        ),
        compiler_params=pltpu.CompilerParams(
            dimension_semantics=("parallel", "arbitrary"),
            vmem_limit_bytes=32 * 1024 * 1024,
        ),
    )(x_feat, x_feat, w, b2)
    return out.reshape(N, K)


def bcnn_reference(x_feat, w, b):
    """Pure-JAX reference of the same math, for a sanity check."""
    N, C, Pp = x_feat.shape
    K = w.shape[0]
    hi = jax.lax.Precision.HIGHEST
    wf = w.astype(jnp.float32).reshape(K, C * C)
    g = jnp.einsum('ncp,ndp->ncd', x_feat, x_feat, precision=hi) / float(Pp)
    g = jnp.sqrt(g + 1e-5).reshape(N, C * C)
    g = g / jnp.maximum(jnp.linalg.norm(g, axis=1, keepdims=True), 1e-12)
    return jnp.dot(g, wf.T, precision=hi) + b.reshape(1, K).astype(jnp.float32)


if __name__ == "__main__":
    key = jax.random.PRNGKey(0)
    k_x, k_w, k_b = jax.random.split(key, 3)

    N = 2
    # Backbone output: ResNet50's last conv stage ends in ReLU, so the feature
    # map is non-negative -> x @ x^T >= 0 and sqrt(g + 1e-5) is NaN-free while
    # keeping the module's plain-sqrt semantics.
    x_nchw = jax.nn.relu(
        jax.random.normal(k_x, (N, FEATURES, FMAP, FMAP), dtype=jnp.float32))
    x_feat = x_nchw.reshape(N, FEATURES, P)

    # fc: Linear(features**2, 2), Xavier-normal weight, stored in bf16 (halves
    # HBM/VMEM traffic of the big weight); all math stays f32 in the kernel.
    fan_in, fan_out = FEATURES * FEATURES, NUM_CLASSES
    std = (2.0 / (fan_in + fan_out)) ** 0.5
    w = (std * jax.random.normal(k_w, (NUM_CLASSES, FEATURES, FEATURES),
                                 dtype=jnp.float32)).astype(jnp.bfloat16)
    b = 0.01 * jax.random.normal(k_b, (NUM_CLASSES,), dtype=jnp.float32)

    out = bcnn_forward(x_feat, w, b, tile_c=64)   # 2 C-tiles: exercises accumulation
    out = jax.block_until_ready(out)

    ref = bcnn_reference(x_feat, w, b)
    assert out.shape == (N, NUM_CLASSES), out.shape
    assert jnp.allclose(out, ref, atol=1e-4, rtol=1e-4), (out, ref)

    print("KERNEL_OK")
</pallas_src>

<mosaic_0001>
module attributes {stable_mosaic.version = 11 : i64} {
  func.func @_bcnn_kernel(%arg0: i32, %arg1: i32, %arg2: memref<1x64x128xf32, #tpu.memory_space<vmem>>, %arg3: memref<1x128x128xf32, #tpu.memory_space<vmem>>, %arg4: memref<2x64x128xbf16, #tpu.memory_space<vmem>>, %arg5: memref<1x2xf32, #tpu.memory_space<vmem>>, %arg6: memref<1x1x2xf32, #tpu.memory_space<vmem>>, %arg7: memref<1x2xf32, #tpu.memory_space<vmem>>, %arg8: memref<1x1xf32, #tpu.memory_space<vmem>>) attributes {dimension_semantics = [#tpu.dimension_semantics<parallel>, #tpu.dimension_semantics<arbitrary>], iteration_bounds = array<i64: 2, 2>, scalar_prefetch = 0 : i64, scratch_operands = 2 : i64, tpu.core_type = #tpu.core_type<tc>, window_params = [{transform_indices = @transform_0, window_bounds = array<i64: 1, 64, 128>}, {transform_indices = @transform_1, window_bounds = array<i64: 1, 128, 128>}, {transform_indices = @transform_2, window_bounds = array<i64: 2, 64, 128>}, {pipeline_mode = #tpu.pipeline_mode<synchronous>, transform_indices = @transform_3, window_bounds = array<i64: 1, 2>}, {transform_indices = @transform_4, window_bounds = array<i64: 1, 1, 2>}]} {
    %c0_i32 = arith.constant 0 : i32
    %0 = arith.cmpi eq, %arg1, %c0_i32 : i32
    %1 = arith.extui %0 : i1 to i32
    %c0_i32_0 = arith.constant 0 : i32
    %2 = arith.cmpi ne, %1, %c0_i32_0 : i32
    scf.if %2 {
      %cst_33 = arith.constant 0.000000e+00 : f32
      %59 = vector.broadcast %cst_33 : f32 to vector<1x2xf32>
      %c0_34 = arith.constant 0 : index
      %c0_35 = arith.constant 0 : index
      %60 = vector.load %arg7[%c0_34, %c0_35] : memref<1x2xf32, #tpu.memory_space<vmem>>, vector<1x2xf32>
      tpu.vector_store %arg7[%c0_34, %c0_35], %59 {strides = array<i32>} : memref<1x2xf32, #tpu.memory_space<vmem>>, vector<1x2xf32>,
      %cst_36 = arith.constant 0.000000e+00 : f32
      %61 = vector.broadcast %cst_36 : f32 to vector<1x1xf32>
      %c0_37 = arith.constant 0 : index
      %c0_38 = arith.constant 0 : index
      %62 = vector.load %arg8[%c0_37, %c0_38] : memref<1x1xf32, #tpu.memory_space<vmem>>, vector<1x1xf32>
      tpu.vector_store %arg8[%c0_37, %c0_38], %61 {strides = array<i32>} : memref<1x1xf32, #tpu.memory_space<vmem>>, vector<1x1xf32>,
    } else {
    }
    %c0 = arith.constant 0 : index
    %c0_1 = arith.constant 0 : index
    %c0_2 = arith.constant 0 : index
    %3 = vector.load %arg2[%c0, %c0_1, %c0_2] : memref<1x64x128xf32, #tpu.memory_space<vmem>>, vector<1x64x128xf32>
    %4 = vector.shape_cast %3 : vector<1x64x128xf32> to vector<64x128xf32>
    %c0_3 = arith.constant 0 : index
    %c0_4 = arith.constant 0 : index
    %c0_5 = arith.constant 0 : index
    %5 = vector.load %arg3[%c0_3, %c0_4, %c0_5] : memref<1x128x128xf32, #tpu.memory_space<vmem>>, vector<1x128x128xf32>
    %6 = vector.shape_cast %5 : vector<1x128x128xf32> to vector<128x128xf32>
    %cst = arith.constant dense<0.000000e+00> : vector<64x128xf32>
    %7 = tpu.matmul %4, %6, %cst {dimension_numbers = #tpu.dot_dimension_numbers<[1], [1], [0], [0], [0, 0, 1, 0], [], []>} : vector<64x128xf32>, vector<128x128xf32>, vector<64x128xf32> -> vector<64x128xf32>
    %cst_6 = arith.constant 0.0204081628 : f32
    %8 = vector.broadcast %cst_6 : f32 to vector<64x128xf32>
    %9 = arith.mulf %7, %8 : vector<64x128xf32>
    %cst_7 = arith.constant 9.99999974E-6 : f32
    %10 = vector.broadcast %cst_7 : f32 to vector<64x128xf32>
    %11 = arith.addf %9, %10 : vector<64x128xf32>
    %12 = math.sqrt %11 : vector<64x128xf32>
    %13 = arith.mulf %12, %12 : vector<64x128xf32>
    %cst_8 = arith.constant dense<0.000000e+00> : vector<64xf32>
    %14 = vector.multi_reduction <add>, %13, %cst_8 [1] : vector<64x128xf32> to vector<64xf32>
    %15 = vector.shape_cast %14 : vector<64xf32> to vector<64x1xf32>
    %c0_9 = arith.constant 0 : index
    %c0_10 = arith.constant 0 : index
    %16 = vector.load %arg8[%c0_9, %c0_10] : memref<1x1xf32, #tpu.memory_space<vmem>>, vector<1x1xf32>
    %cst_11 = arith.constant dense<0.000000e+00> : vector<1xf32>
    %17 = vector.multi_reduction <add>, %15, %cst_11 [0] : vector<64x1xf32> to vector<1xf32>
    %18 = vector.shape_cast %17 : vector<1xf32> to vector<1x1xf32>
    %19 = arith.addf %16, %18 : vector<1x1xf32>
    %c0_12 = arith.constant 0 : index
    %c0_13 = arith.constant 0 : index
    %20 = vector.load %arg8[%c0_12, %c0_13] : memref<1x1xf32, #tpu.memory_space<vmem>>, vector<1x1xf32>
    tpu.vector_store %arg8[%c0_12, %c0_13], %19 {strides = array<i32>} : memref<1x1xf32, #tpu.memory_space<vmem>>, vector<1x1xf32>,
    %21 = tpu.iota {dimensions = array<i32: 1>} : vector<1x2xi32>
    %cst_14 = arith.constant 0.000000e+00 : f32
    %22 = vector.broadcast %cst_14 : f32 to vector<1x2xf32>
    %c0_15 = arith.constant 0 : index
    %c0_16 = arith.constant 0 : index
    %c0_17 = arith.constant 0 : index
    %23 = vector.load %arg4[%c0_15, %c0_16, %c0_17] : memref<2x64x128xbf16, #tpu.memory_space<vmem>>, vector<1x64x128xbf16>
    %24 = vector.shape_cast %23 : vector<1x64x128xbf16> to vector<64x128xbf16>
    %25 = arith.extf %24 : vector<64x128xbf16> to vector<64x128xf32>
    %26 = arith.mulf %12, %25 : vector<64x128xf32>
    %cst_18 = arith.constant dense<0.000000e+00> : vector<64xf32>
    %27 = vector.multi_reduction <add>, %26, %cst_18 [1] : vector<64x128xf32> to vector<64xf32>
    %28 = vector.shape_cast %27 : vector<64xf32> to vector<64x1xf32>
    %cst_19 = arith.constant dense<0.000000e+00> : vector<1xf32>
    %29 = vector.multi_reduction <add>, %28, %cst_19 [0] : vector<64x1xf32> to vector<1xf32>
    %30 = vector.shape_cast %29 : vector<1xf32> to vector<1x1xf32>
    %c0_i32_20 = arith.constant 0 : i32
    %31 = vector.broadcast %c0_i32_20 : i32 to vector<1x2xi32>
    %32 = arith.cmpi eq, %21, %31 : vector<1x2xi32>
    %cst_21 = arith.constant 0.000000e+00 : f32
    %33 = vector.shape_cast %30 : vector<1x1xf32> to vector<1x1xf32>
    %34 = vector.broadcast %33 : vector<1x1xf32> to vector<1x2xf32>
    %35 = vector.broadcast %cst_21 : f32 to vector<1x2xf32>
    %36 = arith.select %32, %34, %35 : vector<1x2xi1>, vector<1x2xf32>
    %37 = arith.addf %22, %36 : vector<1x2xf32>
    %c1 = arith.constant 1 : index
    %c0_22 = arith.constant 0 : index
    %c0_23 = arith.constant 0 : index
    %38 = vector.load %arg4[%c1, %c0_22, %c0_23] : memref<2x64x128xbf16, #tpu.memory_space<vmem>>, vector<1x64x128xbf16>
    %39 = vector.shape_cast %38 : vector<1x64x128xbf16> to vector<64x128xbf16>
    %40 = arith.extf %39 : vector<64x128xbf16> to vector<64x128xf32>
    %41 = arith.mulf %12, %40 : vector<64x128xf32>
    %cst_24 = arith.constant dense<0.000000e+00> : vector<64xf32>
    %42 = vector.multi_reduction <add>, %41, %cst_24 [1] : vector<64x128xf32> to vector<64xf32>
    %43 = vector.shape_cast %42 : vector<64xf32> to vector<64x1xf32>
    %cst_25 = arith.constant dense<0.000000e+00> : vector<1xf32>
    %44 = vector.multi_reduction <add>, %43, %cst_25 [0] : vector<64x1xf32> to vector<1xf32>
    %45 = vector.shape_cast %44 : vector<1xf32> to vector<1x1xf32>
    %c1_i32 = arith.constant 1 : i32
    %46 = vector.broadcast %c1_i32 : i32 to vector<1x2xi32>
    %47 = arith.cmpi eq, %21, %46 : vector<1x2xi32>
    %cst_26 = arith.constant 0.000000e+00 : f32
    %48 = vector.shape_cast %45 : vector<1x1xf32> to vector<1x1xf32>
    %49 = vector.broadcast %48 : vector<1x1xf32> to vector<1x2xf32>
    %50 = vector.broadcast %cst_26 : f32 to vector<1x2xf32>
    %51 = arith.select %47, %49, %50 : vector<1x2xi1>, vector<1x2xf32>
    %52 = arith.addf %37, %51 : vector<1x2xf32>
    %c0_27 = arith.constant 0 : index
    %c0_28 = arith.constant 0 : index
    %53 = vector.load %arg7[%c0_27, %c0_28] : memref<1x2xf32, #tpu.memory_space<vmem>>, vector<1x2xf32>
    %54 = arith.addf %53, %52 : vector<1x2xf32>
    %c0_29 = arith.constant 0 : index
    %c0_30 = arith.constant 0 : index
    %55 = vector.load %arg7[%c0_29, %c0_30] : memref<1x2xf32, #tpu.memory_space<vmem>>, vector<1x2xf32>
    tpu.vector_store %arg7[%c0_29, %c0_30], %54 {strides = array<i32>} : memref<1x2xf32, #tpu.memory_space<vmem>>, vector<1x2xf32>,
    %c1_i32_31 = arith.constant 1 : i32
    %56 = arith.cmpi eq, %arg1, %c1_i32_31 : i32
    %57 = arith.extui %56 : i1 to i32
    %c0_i32_32 = arith.constant 0 : i32
    %58 = arith.cmpi ne, %57, %c0_i32_32 : i32
    scf.if %58 {
      %c0_33 = arith.constant 0 : index
      %c0_34 = arith.constant 0 : index
      %59 = vector.load %arg8[%c0_33, %c0_34] : memref<1x1xf32, #tpu.memory_space<vmem>>, vector<1x1xf32>
      %60 = math.sqrt %59 : vector<1x1xf32>
      %cst_35 = arith.constant 9.99999996E-13 : f32
      %61 = vector.broadcast %cst_35 : f32 to vector<1x1xf32>
      %62 = arith.maximumf %60, %61 : vector<1x1xf32>
      %c0_36 = arith.constant 0 : index
      %c0_37 = arith.constant 0 : index
      %63 = vector.load %arg7[%c0_36, %c0_37] : memref<1x2xf32, #tpu.memory_space<vmem>>, vector<1x2xf32>
      %64 = vector.broadcast %62 : vector<1x1xf32> to vector<1x2xf32>
      %65 = arith.divf %63, %64 : vector<1x2xf32>
      %c0_38 = arith.constant 0 : index
      %c0_39 = arith.constant 0 : index
      %66 = vector.load %arg5[%c0_38, %c0_39] : memref<1x2xf32, #tpu.memory_space<vmem>>, vector<1x2xf32>
      %67 = arith.addf %65, %66 : vector<1x2xf32>
      %c0_40 = arith.constant 0 : index
      %c0_41 = arith.constant 0 : index
      %c0_42 = arith.constant 0 : index
      %68 = vector.load %arg6[%c0_40, %c0_41, %c0_42] : memref<1x1x2xf32, #tpu.memory_space<vmem>>, vector<1x1x2xf32>
      %69 = vector.shape_cast %68 : vector<1x1x2xf32> to vector<1x2xf32>
      %70 = vector.shape_cast %67 : vector<1x2xf32> to vector<1x1x2xf32>
      tpu.vector_store %arg6[%c0_40, %c0_41, %c0_42], %70 {strides = array<i32>} : memref<1x1x2xf32, #tpu.memory_space<vmem>>, vector<1x1x2xf32>,
    } else {
    }
    return
  }
  func.func @transform_0(%arg0: i32, %arg1: i32) -> (i32, i32, i32) {
    %c0_i32 = arith.constant 0 : i32
    %c0_i32_0 = arith.constant 0 : i32
    return %arg0, %arg1, %c0_i32 : i32, i32, i32
  }
  func.func @transform_1(%arg0: i32, %arg1: i32) -> (i32, i32, i32) {
    %c0_i32 = arith.constant 0 : i32
    %c0_i32_0 = arith.constant 0 : i32
    %c0_i32_1 = arith.constant 0 : i32
    return %arg0, %c0_i32, %c0_i32_0 : i32, i32, i32
  }
  func.func @transform_2(%arg0: i32, %arg1: i32) -> (i32, i32, i32) {
    %c0_i32 = arith.constant 0 : i32
    %c0_i32_0 = arith.constant 0 : i32
    %c0_i32_1 = arith.constant 0 : i32
    return %c0_i32, %arg1, %c0_i32_0 : i32, i32, i32
  }
  func.func @transform_3(%arg0: i32, %arg1: i32) -> (i32, i32) {
    %c0_i32 = arith.constant 0 : i32
    %c0_i32_0 = arith.constant 0 : i32
    %c0_i32_1 = arith.constant 0 : i32
    return %c0_i32, %c0_i32_0 : i32, i32
  }
  func.func @transform_4(%arg0: i32, %arg1: i32) -> (i32, i32, i32) {
    %c0_i32 = arith.constant 0 : i32
    %c0_i32_0 = arith.constant 0 : i32
    %c0_i32_1 = arith.constant 0 : i32
    return %arg0, %c0_i32, %c0_i32_0 : i32, i32, i32
  }
}

</mosaic_0001>

<bundles_post_ra>
// kernel: tpu_custom_call.1
= control target key start
LH: loop header
LB: loop body
LE: loop exit
PB: predicated region body
PF: predicated region fallthrough
CT: control target
= control target key end

     0   :  { %s1857_s0 = inlined_call_operand.hbm [shape: f32[2,128,128], index: 0, kind: input, shape index: {}]   ;;  %s1858_s1 = inlined_call_operand.hbm [shape: f32[2,128,128], index: 1, kind: input, shape index: {}]   ;;  %s1859_s2 = inlined_call_operand.hbm [shape: bf16[2,128,128], index: 2, kind: input, shape index: {}]   ;;  %s1860_s3 = inlined_call_operand.vmem [shape: f32[1,2], index: 3, kind: input, shape index: {}]   ;;  %s1861_s4 = inlined_call_operand.hbm [shape: f32[2,1,2], index: 4, kind: output, shape index: {}]  }
   0x1   :  { %1883 = sst [smem:[#allocation35_spill]] %s1860_s3 }
   0x2   :  { %1884 = sst [smem:[#allocation36_spill]] %s1861_s4 }
   0x3   :  { %9 = vsyncpa [#allocation5], 0 }
   0x4   :  { %11 = vsyncpa [#allocation5 + $0x1], 0 }
   0x5   :  { %12 = vsyncpa [#allocation8], 0 }
   0x6   :  { %14 = vsyncpa [#allocation8 + $0x1], 0 }
   0x7   :  { %15 = vsyncpa [#allocation6], 0 }
   0x8   :  { %17 = vsyncpa [#allocation6 + $0x1], 0  ;;  %s1396_s15 = smov 0   ;;  %s1398_s16 = smov 0  }
   0x9   :  { %s1400_s17 = smov 0   ;;  %s1402_s18 = smov 0  }
   0xa   :  { %s1404_s19 = smov 0   ;;  %s1406_s20 = smov 0  }
   0xb   :  { %s1408_s21 = smov 0   ;;  %s1410_s22 = smov 0  }
   0xc   :  { %s1412_s23 = smov 0   ;;  %s1414_s24 = smov 0  }
   0xd   :  { %s1416_s25 = smov 0   ;;  %s1418_s26 = smov 0  }
   0xe   :  { %s1420_s27 = smov 0   ;;  %s1422_s28 = smov 0  }
   0xf LB: > { %1885 = sst [smem:[#allocation18_spill]] %s1311_s16  ;;  %s1465_s29 = sadd.s32 4294967295, %s1359_s28   ;;  %s1359_s28 = sphi %s1422_s28, %s23_s28   ;;  %s1355_s27 = sphi %s1420_s27, %s1949_s27   ;;  %s1351_s26 = sphi %s1418_s26, %s1948_s26   ;;  %s1347_s25 = sphi %s1416_s25, %s1947_s25   ;;  %s1343_s24 = sphi %s1414_s24, %s1946_s24   ;;  %s1339_s23 = sphi %s1412_s23, %s1945_s23   ;;  %s1335_s22 = sphi %s1410_s22, %s1944_s22   ;;  %s1331_s21 = sphi %s1408_s21, %s1943_s21   ;;  %s1327_s20 = sphi %s1406_s20, %s1942_s20   ;;  %s1323_s19 = sphi %s1404_s19, %s1941_s19   ;;  %s1319_s18 = sphi %s1402_s18, %s1932_s18   ;;  %s1315_s17 = sphi %s1400_s17, %s1940_s17   ;;  %s1311_s16 = sphi %s1398_s16, %s1939_s16   ;;  %s1307_s15 = sphi %s1396_s15, %s1930_s15  }
  0x10   : > { %1886 = sst [smem:[#allocation19_spill]] %s1319_s18  ;;  %s32_s5 = sadd.s32 1, %s1351_s26 }
  0x11   : > { %1887 = sst [smem:[#allocation20_spill]] %s1323_s19  ;;  %s35_s6 = sadd.s32 1, %s1355_s27 }
  0x12   : > { %1888 = sst [smem:[#allocation21_spill]] %s1339_s23  ;;  %p33_p0 = scmp.ge.s32.totalorder %s32_s5, 2 }
  0x13   : > { %1889 = sst [smem:[#allocation22_spill]] %s1343_s24  ;;  %s44_s7 = sadd.s32 1, %s1339_s23 }
  0x14   : > { %1890 = sst [smem:[#allocation23_spill]] %s1347_s25  ;;  %p51_p1 = scmp.ne.s32.totalorder %s1339_s23, %s1335_s22 }
  0x15   : > { %1891 = sst [smem:[#allocation24_spill]] %s1465_s29  ;;  %p52_p2 = scmp.eq.s32.totalorder %s1359_s28, 0 }
  0x16   : > { %s1951_s5 = smov (%p33_p0, %s32_s5), 0  ;;  %s1953_s6 = smov (!%p33_p0, %s35_s6), %s1355_s27 }
  0x17   : > { %1892 = sst [smem:[#allocation25_spill]] %s1951_s5  ;;  %s40_s8 = ssub.s32 %s1351_s26, %s1951_s5 }
  0x18   : > { %p1481_p3 = por %p52_p2, %p51_p1  ;;  %p37_p4 = scmp.ge.s32.totalorder %s1953_s6, 2 }
  0x19   : > { %p57_p5 = scmp.ne.s32.totalorder %s1335_s22, %s1331_s21  ;;  %p58_p6 = scmp.eq.s32.totalorder %s1465_s29, 0 }
  0x1a   : > { %s70_s10 = sadd.s32 1, %s1327_s20  ;;  %s1955_s6 = smov (%p37_p4, %s1953_s6), 0 }
  0x1b   : > { %1894 = sst [smem:[#allocation26_spill]] %s1955_s6  ;;  %p1492_p7 = por %p58_p6, %p57_p5 }
  0x1c   : > { %p1864_p8 = scmp.ne.s32.totalorder %s1327_s20, %s1323_s19  ;;  %s39_s12 = ssub.s32 %s1355_s27, %s1955_s6 }
  0x1d   : > { %s1895_s11 = scalar_select %p1492_p7, 1, 0 }
  0x1e   : > { %p1865_p9 = scmp.ne.s32.totalorder %s1323_s19, %s1319_s18  ;;  %s41_s13 = sor.u32 %s40_s8, %s39_s12 }
  0x1f   : > { %1896 = sst [smem:[#allocation27_spill]] %s1895_s11  ;;  %p68_p10 = scmp.eq.s32.totalorder %s39_s12, 0 }
  0x20   : > { %p42_p11 = scmp.eq.s32.totalorder %s41_s13, 0  ;;  %p1507_p12 = por %p1864_p8, %p52_p2 }
  0x21   : > { %s1512_s21 = scalar_select %p68_p10, %s1327_s20, %s70_s10  }
  0x22   : > { %s1515_s30 = scalar_select %p42_p11, %s1339_s23, %s44_s7  }
  0x23   : > { %1898 = sst [smem:[#allocation28_spill]] %s1512_s21  ;;  %p1522_p13 = por %p1865_p9, %p58_p6 }
  0x24   : > { %1899 = sst [smem:[#allocation29_spill]] %s1515_s30  ;;  %p94_p0 = scmp.eq.s32.totalorder %s40_s8, 0 }
  0x25   : > { %s1900_s6 = scalar_select %p1522_p13, 1, 0 }
  0x26   : > { %s96_s12 = sadd.s32 1, %s1315_s17  ;;  %p103_p1 = scmp.ne.s32.totalorder %s1315_s17, %s1311_s16 }
  0x27   : > { %1901 = sst [smem:[#allocation30_spill]] %s1900_s6  ;;  %p109_p5 = scmp.ne.s32.totalorder %s1311_s16, %s1307_s15 }
  0x28   : > { %s1530_s13 = scalar_select %p94_p0, %s1315_s17, %s96_s12  }
  0x29   : > { %p1534_p4 = por %p103_p1, %p52_p2  ;;  %p154_p10 = scmp.eq.s32.totalorder %s1465_s29, 3 }
  0x2a   : > { %1902 = sst [smem:[#allocation31_spill]] %s1530_s13  ;;  %s1904_s7 = sadd.s32 4294967294, %s1359_s28  }
  0x2b   : > { %p160_p11 = scmp.eq.s32.totalorder %s1904_s7, 3  ;;  %p1545_p8 = por %p109_p5, %p58_p6 }
  0x2c   : > { %p1907_p9 = scmp.ne.s32.totalorder %s1327_s20, %s1323_s19  ;;  %p1910_p0 = scmp.ne.s32.totalorder %s1323_s19, %s1319_s18 }
  0x2d   : > { %s1905_s10 = scalar_select %p1545_p8, 1, 0 }
  0x2e   : > { %p1552_p13 = por %p154_p10, %p1907_p9  ;;  %p1559_p7 = por %p160_p11, %p1910_p0 }
  0x2f   : > { %1906 = sst [smem:[#allocation32_spill]] %s1905_s10  ;;  %p868_p2 = scmp.ge.s32.totalorder %s1359_s28, 4 }
  0x30   : > { %s1908_s8 = scalar_select %p1552_p13, 1, 0 }
  0x31   : > { %s1911_s12 = scalar_select %p1559_p7, 1, 0 }
  0x32   : > { %1909 = sst [smem:[#allocation33_spill]] %s1908_s8  ;;  %179 = sbr.rel (%p868_p2) target bundleno = 79 (0x4f), region = 20 }
  0x33   : > { %1912 = sst [smem:[#allocation34_spill]] %s1911_s12  ;;  %s183_s15 = sand.u32 (!%p868_p2), 1, %s1339_s23  }
  0x34   : > { %s870_s7 = sshll.u32 (!%p868_p2), %s1351_s26, 3  ;;  %s869_s30 = sshll.u32 (!%p868_p2), %s183_s15, 6 }
  0x35   : > { %s871_s21 = sshll.u32 (!%p868_p2), %s1355_s27, 4  ;;  %s187_s18 = scalar_lea.vmem (!%p868_p2), [#allocation4], %s869_s30 }
  0x36   : > { %s192_s13 = sadd.s32 (!%p868_p2), %s871_s21, %s870_s7  ;;  %s197_s8 = sshll.u32 (!%p868_p2), %s187_s18, 4  ;;  %s198_s8 = int_to_ptr.vmem [resolvable:$true] %s197_s8 }
  0x37   : > { %s872_s4 = sshll.u32 %s192_s13, 3  ;;  %s207_s10 = sand.u32 1, %s1359_s28  }
  0x38   : > { %s194_s3 = scalar_lea.hbm %s1857_s0, %s872_s4  ;;  %s184_s23 = scalar_lea.sflag [#allocation5], %s183_s15 }
  0x39   : > { %s195_s24 = sshll.u32 %s194_s3, 4  ;;  %s1361_s16 = smov 128   ;;  %s196_s24 = int_to_ptr.hbm [resolvable:$true] %s195_s24 }
  0x3a   : > { %s1362_s6 = smov 8   ;;  %s209_s19 = sand.u32 1, %s1327_s20  }
  0x3b   : > { %986 = dma.hbm_to_vmem [thread:$0]  (%p1481_p3), %s196_s24, 1024, %s198_s8, %s184_s23, %s1361_s16, %s1361_s16, %s1362_s6  }
  0x3c   : > { %s873_s29 = sshll.u32 %s209_s19, 7  ;;  %s897_s21 = sshll.u32 %s1355_s27, 7 }
  0x3d   : > { %s216_s13 = scalar_lea.hbm %s1858_s1, %s897_s21  ;;  %s211_s11 = scalar_lea.vmem [#allocation7], %s873_s29 }
  0x3e   : > { %s217_s7 = sshll.u32 %s216_s13, 4  ;;  %s219_s25 = sshll.u32 %s211_s11, 4  ;;  %s218_s7 = int_to_ptr.hbm [resolvable:$true] %s217_s7  ;;  %s220_s25 = int_to_ptr.vmem [resolvable:$true] %s219_s25 }
  0x3f   : > { %s1578_s3 = scalar_lea.sflag [#allocation8], %s207_s10 }
  0x40   : > { %987 = dma.hbm_to_vmem [thread:$0]  (%p1507_p12), %s218_s7, 2048, %s220_s25, %s1578_s3, %s1361_s16, %s1361_s16, %s1362_s6  }
  0x41   : > { %s231_s4 = sand.u32 1, %s1315_s17   ;;  %s898_s19 = sshll.u32 %s1351_s26, 5 }
  0x42   : > { %s876_s23 = sshll.u32 %s231_s4, 6  ;;  %s238_s29 = scalar_lea.hbm %s1859_s2, %s898_s19 }
  0x43   : > { %s251_s11 = sshll.u32 %s238_s29, 4  ;;  %s233_s16 = scalar_lea.vmem [#allocation9], %s876_s23  ;;  %s252_s11 = int_to_ptr.hbm [resolvable:$true] %s251_s11 }
  0x44   : > { %s988_s14 = scalar_select %p1534_p4, [#allocation0], [#allocation13] }
  0x45   : > { %s253_s6 = sshll.u32 %s233_s16, 4  ;;  %s1363_s8 = smov 1024   ;;  %s254_s6 = int_to_ptr.vmem [resolvable:$true] %s253_s6 }
  0x46   : > { %s243_s10 = sld [smem:[%s988_s14]]   ;;  %s1364_s12 = smov 512  }
  0x47   : > { %989 = sst [smem:[#allocation12]] (%p1534_p4), %s1363_s8  ;;  %s1365_s15 = smov 8  }
  0x48   : > { %990 = sst [smem:[#allocation12 + $0x1]] (%p1534_p4), %s1364_s12  ;;  %s1366_s21 = smov 64  }
  0x49   : > { %991 = sst [smem:[#allocation12 + $0x2]] (%p1534_p4), %s1365_s15  ;;  %s1367_s13 = smov 4  }
  0x4a   : > { %992 = sst [smem:[#allocation12 + $0x3]] (%p1534_p4), %s1366_s21  ;;  %s1368_s7 = smov [#allocation11]  }
  0x4b   : > { %993 = sst [smem:[#allocation12 + $0x4]] (%p1534_p4), %s1366_s21 }
  0x4c   : > { %s879_s30 = sshll.u32 %s243_s10, 26  ;;  %994 = sst [smem:[#allocation12 + $0x5]] (%p1534_p4), %s1367_s13 }
  0x4d   : > { %s880_s18 = sadd.s32 134217728, %s879_s30 }
  0x4e   : > { %995 = dma.general (%p1534_p4), %s252_s11, 1024, %s254_s6, %s1578_s3, %s1368_s7, [#allocation12], %s880_s18, 0  }
  0x4f PF: > { %p881_p3 = scmp.ge.s32.totalorder %s1359_s28, 1  ;;  %p274_p6 = scmp.lt.s32.totalorder %s1359_s28, 5 }
  0x51   : > { %p275_p9 = pnand %p881_p3, %p274_p6 }
  0x52   : > { %s1913_s25 = sld [smem:[#allocation27_spill]] (!%p275_p9)  ;;  %s280_s4 = sand.u32 (!%p275_p9), 1, %s1335_s22  }
  0x53   : > { %278 = sbr.rel (%p275_p9) target bundleno = 726 (0x2d6), region = 36  ;;  %s882_s19 = sshll.u32 (!%p275_p9), %s280_s4, 6 }
  0x54   : > { %s281_s23 = scalar_lea.sflag (!%p275_p9), [#allocation5], %s280_s4  ;;  %s1608_s24 = scalar_lea.vmem (!%p275_p9), [#allocation4], %s882_s19 }
  0x58   : > { %p1914_p12 = scmp.ne.s32.totalorder %s1913_s25, 0 }
  0x5a   : > { %1290 = dma.done.wait (%p1914_p12), %s281_s23, 1024  }
  0x5b   : > { %1292 = vsyncadd (%p1914_p12), %s281_s23, 4294966272  ;;  %s1915_s5 = sld [smem:[#allocation24_spill]] }
  0x5c   : > { %s1916_s3 = sld [smem:[#allocation20_spill]] }
  0x5d   : > { %s1917_s9 = sld [smem:[#allocation30_spill]] }
  0x61   : > { %s290_s29 = sand.u32 1, %s1915_s5  }
  0x62   : > { %s1616_s11 = sand.u32 1, %s1916_s3   ;;  %s291_s16 = scalar_lea.sflag [#allocation8], %s290_s29 }
  0x63   : > { %s883_s14 = sshll.u32 %s1616_s11, 7  ;;  %p1918_p1 = scmp.ne.s32.totalorder %s1917_s9, 0 }
  0x64   : > { %s1619_s6 = scalar_lea.vmem [#allocation7], %s883_s14 }
  0x65   : > { %1294 = dma.done.wait (%p1918_p1), %s291_s16, 2048  }
  0x66   : > { %1296 = vsyncadd (%p1918_p1), %s291_s16, 4294965248  ;;  %s1919_s10 = sld [smem:[#allocation18_spill]] }
  0x6c   : > { %s302_s12 = sand.u32 1, %s1919_s10  }
  0x6d   : > { %s884_s15 = sshll.u32 %s302_s12, 6 }
  0x6e   : > { %s1626_s21 = scalar_lea.vmem [#allocation9], %s884_s15 }
  0x6f   : > { %1298 = dma.done.wait (%p1545_p8), %s291_s16, 1024  }
  0x70   : > { %1300 = vsyncadd (%p1545_p8), %s291_s16, 4294966272  ;;  %s338_s30 = scalar_lea.vmem [#allocation10], %s1616_s11  ;;  %s1921_s18 = sld [smem:[#allocation22_spill]] }
  0x76   : > { %p885_p4 = scmp.ne.s32.totalorder %s1921_s18, 0 }
  0x78   : > { %344 = sbr.rel (%p885_p4) target bundleno = 128 (0x80), region = 52 }
  0x7d   : > { %vm345_vm0 = vcmask 8192   ;;  %vm347_vm1 = vcmask 0   ;;  %v1369_v0 = vmov 0.0  }
  0x7e   : > { %346 = vst.msk [vmem:[#allocation2] sm:$0x1] %vm345_vm0, %v1369_v0 }
  0x7f   : > { %348 = vst.msk [vmem:[#allocation3] sm:$0x1] %vm347_vm1, %v1369_v0 }
  0x80 PF: > { %v372_v1 = vld [vmem:[%s1619_s6 + $0x78] sm:$0xff]  ;;  %v371_v2 = vld [vmem:[%s1619_s6 + $0x70] sm:$0xff]  ;;  %v370_v3 = vld [vmem:[%s1619_s6 + $0x68] sm:$0xff]  ;;  %s1922_s13 = sld [smem:[#allocation22_spill]] }
  0x81   : > { %373 = vmatpush.xpose.msra.mxu0 %v372_v1  ;;  %938 = vmatpush.xpose.msra.mxu1 %v372_v1  ;;  %v369_v4 = vld [vmem:[%s1619_s6 + $0x60] sm:$0xff]  ;;  %v368_v5 = vld [vmem:[%s1619_s6 + $0x58] sm:$0xff]  ;;  %v367_v6 = vld [vmem:[%s1619_s6 + $0x50] sm:$0xff] }
  0x82   : > { %939 = vmatpush.xpose.msra.mxu2 %v372_v1  ;;  %940 = vmatpush.xpose.msra.mxu3 %v372_v1  ;;  %v366_v7 = vld [vmem:[%s1619_s6 + $0x48] sm:$0xff]  ;;  %v365_v8 = vld [vmem:[%s1619_s6 + $0x40] sm:$0xff]  ;;  %v364_v9 = vld [vmem:[%s1619_s6 + $0x38] sm:$0xff] }
  0x83   : > { %v363_v10 = vld [vmem:[%s1619_s6 + $0x30] sm:$0xff]  ;;  %v362_v11 = vld [vmem:[%s1619_s6 + $0x28] sm:$0xff]  ;;  %v361_v12 = vld [vmem:[%s1619_s6 + $0x20] sm:$0xff] }
  0x84   : > { %v360_v13 = vld [vmem:[%s1619_s6 + $0x18] sm:$0xff]  ;;  %v359_v14 = vld [vmem:[%s1619_s6 + $0x10] sm:$0xff]  ;;  %v358_v15 = vld [vmem:[%s1619_s6 + $0x8] sm:$0xff] }
  0x85   : > { %374 = vmatpush.xpose.msra.mxu0 %v371_v2  ;;  %941 = vmatpush.xpose.msra.mxu1 %v371_v2  ;;  %v357_v16 = vld [vmem:[%s1619_s6] sm:$0xff]  ;;  %v351_v18 = vld [vmem:[%s1608_s24 + $0x10] sm:$0xff]  ;;  %v350_v21 = vld [vmem:[%s1608_s24 + $0x8] sm:$0xff] }
  0x86   : > { %942 = vmatpush.xpose.msra.mxu2 %v371_v2  ;;  %943 = vmatpush.xpose.msra.mxu3 %v371_v2  ;;  %v349_v17 = vld [vmem:[%s1608_s24] sm:$0xff]  ;;  %v355_v20 = vld [vmem:[%s1608_s24 + $0x30] sm:$0xff]  ;;  %v352_v22 = vld [vmem:[%s1608_s24 + $0x18] sm:$0xff]  ;;  %p894_p8 = scmp.ne.s32.totalorder %s1922_s13, 1 }
  0x87   : > { %v353_v19 = vld [vmem:[%s1608_s24 + $0x20] sm:$0xff]  ;;  %v354_v23 = vld [vmem:[%s1608_s24 + $0x28] sm:$0xff]  ;;  %v356_v24 = vld [vmem:[%s1608_s24 + $0x38] sm:$0xff]  ;;  %s1923_s4 = sld [smem:[#allocation35_spill]] (!%p894_p8) }
  0x88   : > { %v1678_v49 = vld [vmem:[%s1626_s21 + $0x8] sm:$0xff]   ;;  %v1681_v51 = vld [vmem:[%s1626_s21 + $0x20] sm:$0xff]  }
  0x89   : > { %375 = vmatpush.xpose.msra.mxu0 %v370_v3  ;;  %944 = vmatpush.xpose.msra.mxu1 %v370_v3  ;;  %v1684_v56 = vld [vmem:[%s1626_s21] sm:$0xff]   ;;  %v905_v59 = vunpack.c.l.bf16 %v1678_v49  ;;  %v917_v60 = vunpack.c.l.bf16 %v1681_v51 }
  0x8a   : > { %945 = vmatpush.xpose.msra.mxu2 %v370_v3  ;;  %946 = vmatpush.xpose.msra.mxu3 %v370_v3  ;;  %v901_v3 = vunpack.c.l.bf16 %v1684_v56 }
  0x8d   : > { %376 = vmatpush.xpose.msra.mxu0 %v369_v4  ;;  %947 = vmatpush.xpose.msra.mxu1 %v369_v4 }
  0x8e   : > { %948 = vmatpush.xpose.msra.mxu2 %v369_v4  ;;  %949 = vmatpush.xpose.msra.mxu3 %v369_v4 }
  0x91   : > { %377 = vmatpush.xpose.msra.mxu0 %v368_v5  ;;  %950 = vmatpush.xpose.msra.mxu1 %v368_v5 }
  0x92   : > { %951 = vmatpush.xpose.msra.mxu2 %v368_v5  ;;  %952 = vmatpush.xpose.msra.mxu3 %v368_v5 }
  0x95   : > { %378 = vmatpush.xpose.msra.mxu0 %v367_v6  ;;  %953 = vmatpush.xpose.msra.mxu1 %v367_v6 }
  0x96   : > { %954 = vmatpush.xpose.msra.mxu2 %v367_v6  ;;  %955 = vmatpush.xpose.msra.mxu3 %v367_v6 }
  0x99   : > { %379 = vmatpush.xpose.msra.mxu0 %v366_v7  ;;  %956 = vmatpush.xpose.msra.mxu1 %v366_v7 }
  0x9a   : > { %957 = vmatpush.xpose.msra.mxu2 %v366_v7  ;;  %958 = vmatpush.xpose.msra.mxu3 %v366_v7 }
  0x9d   : > { %380 = vmatpush.xpose.msra.mxu0 %v365_v8  ;;  %959 = vmatpush.xpose.msra.mxu1 %v365_v8 }
  0x9e   : > { %960 = vmatpush.xpose.msra.mxu2 %v365_v8  ;;  %961 = vmatpush.xpose.msra.mxu3 %v365_v8 }
  0xa1   : > { %381 = vmatpush.xpose.msra.mxu0 %v364_v9  ;;  %962 = vmatpush.xpose.msra.mxu1 %v364_v9 }
  0xa2   : > { %963 = vmatpush.xpose.msra.mxu2 %v364_v9  ;;  %964 = vmatpush.xpose.msra.mxu3 %v364_v9 }
  0xa5   : > { %382 = vmatpush.xpose.msra.mxu0 %v363_v10  ;;  %965 = vmatpush.xpose.msra.mxu1 %v363_v10 }
  0xa6   : > { %966 = vmatpush.xpose.msra.mxu2 %v363_v10  ;;  %967 = vmatpush.xpose.msra.mxu3 %v363_v10 }
  0xa9   : > { %383 = vmatpush.xpose.msra.mxu0 %v362_v11  ;;  %968 = vmatpush.xpose.msra.mxu1 %v362_v11 }
  0xaa   : > { %969 = vmatpush.xpose.msra.mxu2 %v362_v11  ;;  %970 = vmatpush.xpose.msra.mxu3 %v362_v11 }
  0xad   : > { %384 = vmatpush.xpose.msra.mxu0 %v361_v12  ;;  %971 = vmatpush.xpose.msra.mxu1 %v361_v12 }
  0xae   : > { %972 = vmatpush.xpose.msra.mxu2 %v361_v12  ;;  %973 = vmatpush.xpose.msra.mxu3 %v361_v12 }
  0xb1   : > { %385 = vmatpush.xpose.msra.mxu0 %v360_v13  ;;  %974 = vmatpush.xpose.msra.mxu1 %v360_v13 }
  0xb2   : > { %975 = vmatpush.xpose.msra.mxu2 %v360_v13  ;;  %976 = vmatpush.xpose.msra.mxu3 %v360_v13 }
  0xb5   : > { %386 = vmatpush.xpose.msra.mxu0 %v359_v14  ;;  %977 = vmatpush.xpose.msra.mxu1 %v359_v14 }
  0xb6   : > { %978 = vmatpush.xpose.msra.mxu2 %v359_v14  ;;  %979 = vmatpush.xpose.msra.mxu3 %v359_v14 }
  0xb9   : > { %387 = vmatpush.xpose.msra.mxu0 %v358_v15  ;;  %980 = vmatpush.xpose.msra.mxu1 %v358_v15 }
  0xba   : > { %981 = vmatpush.xpose.msra.mxu2 %v358_v15  ;;  %982 = vmatpush.xpose.msra.mxu3 %v358_v15 }
  0xbd   : > { %388 = vmatpush.xpose.msra.mxu0 %v357_v16  ;;  %983 = vmatpush.xpose.msra.mxu1 %v357_v16 }
  0xbe   : > { %984 = vmatpush.xpose.msra.mxu2 %v357_v16  ;;  %985 = vmatpush.xpose.msra.mxu3 %v357_v16 }
  0xc0   : > { %389 = vmatmul.f32.vlgmr.msra.gmra.mxu0 %v349_v17  ;;  %395 = vmatmul.f32.vlgmr.msra.gmra.mxu1 %v351_v18 }
  0xc1   : > { %401 = vmatmul.f32.vlgmr.msra.gmra.mxu2 %v353_v19  ;;  %407 = vmatmul.f32.vlgmr.msra.gmra.mxu3 %v355_v20 }
  0xc8   : > { %392 = vmatmul.f32.gmra.mxu0 %v350_v21  ;;  %398 = vmatmul.f32.gmra.mxu1 %v352_v22 }
  0xc9   : > { %404 = vmatmul.f32.gmra.mxu2 %v354_v23  ;;  %410 = vmatmul.f32.gmra.mxu3 %v356_v24 }
 0x13d   : > { %v390_v25 = vpop.f32.mrf.mxu0  ;;  %v396_v26 = vpop.f32.mrf.mxu1 }
 0x13e   : > { %v414_v27 = vmul.f32 0.020408163, %v390_v25  ;;  %v416_v28 = vmul.f32 0.020408163, %v396_v26  ;;  %v1711_v25 = vld [vmem:[%s1626_s21 + $0x28] sm:$0xff]  }
 0x140   : > { %v1658_v29 = vadd.f32 1e-05, %v414_v27  ;;  %v1660_v30 = vadd.f32 1e-05, %v416_v28 }
 0x142   : > { %1128 = vrsqrt.f32 %v1658_v29  ;;  %vm461_vm2 = vcmp.eq.f32.partialorder %v1660_v30, inf  ;;  %v464_v6 = vand.u32 2147483648, %v1660_v30  ;;  %vm437_vm3 = vcmp.eq.f32.partialorder %v1658_v29, inf }
 0x143   : > { %1130 = vrsqrt.f32 %v1660_v30  ;;  %vm439_vm4 = vcmp.eq.f32.partialorder %v1658_v29, 0.0  ;;  %v440_v9 = vand.u32 2147483648, %v1658_v29  ;;  %vm463_vm5 = vcmp.eq.f32.partialorder %v1660_v30, 0.0 }
 0x144   : > { %v402_v31 = vpop.f32.mrf.mxu2  ;;  %v408_v32 = vpop.f32.mrf.mxu3 }
 0x145   : > { %v418_v33 = vmul.f32 0.020408163, %v402_v31  ;;  %v420_v34 = vmul.f32 0.020408163, %v408_v32  ;;  %v393_v35 = vpop.f32.mrf.mxu0  ;;  %v399_v37 = vpop.f32.mrf.mxu1 }
 0x146   : > { %v415_v36 = vmul.f32 0.020408163, %v393_v35  ;;  %v417_v43 = vmul.f32 0.020408163, %v399_v37 }
 0x147   : > { %v1664_v38 = vadd.f32 1e-05, %v418_v33  ;;  %v1666_v39 = vadd.f32 1e-05, %v420_v34 }
 0x148   : > { %v1129_v40 = vpop.eup %1128  ;;  %v1668_v41 = vadd.f32 1e-05, %v415_v36  ;;  %v1675_v48 = vadd.f32 1e-05, %v417_v43  ;;  %v1722_v43 = vld [vmem:[%s1626_s21 + $0x30] sm:$0xff]  }
 0x149   : > { %v1131_v42 = vpop.eup %1130  ;;  %1132 = vrsqrt.f32 %v1664_v38  ;;  %v431_v44 = vmul.f32 %v1129_v40, %v1658_v29  ;;  %vm485_vm6 = vcmp.eq.f32.partialorder %v1664_v38, inf  ;;  %vm487_vm7 = vcmp.eq.f32.partialorder %v1664_v38, 0.0 }
 0x14a   : > { %1134 = vrsqrt.f32 %v1666_v39  ;;  %v455_v45 = vmul.f32 %v1131_v42, %v1660_v30  ;;  %vm509_vm8 = vcmp.eq.f32.partialorder %v1666_v39, inf  ;;  %vm449_vm9 = vcmp.eq.f32.partialorder %v1668_v41, inf }
 0x14b   : > { %1136 = vrsqrt.f32 %v1668_v41  ;;  %v432_v46 = vmul.f32 %v1129_v40, %v431_v44  ;;  %vm511_vm10 = vcmp.eq.f32.partialorder %v1666_v39, 0.0  ;;  %vm451_vm11 = vcmp.eq.f32.partialorder %v1668_v41, 0.0 }
 0x14c   : > { %v456_v47 = vmul.f32 %v1131_v42, %v455_v45  ;;  %v405_v52 = vpop.f32.mrf.mxu2  ;;  %1138 = vrsqrt.f32 %v1675_v48  ;;  %v411_v13 = vpop.f32.mrf.mxu3  ;;  %v1727_v45 = vld [vmem:[%s1626_s21 + $0x10] sm:$0xff]   ;;  %vm473_vm12 = vcmp.eq.f32.partialorder %v1675_v48, inf  ;;  %vm475_vm13 = vcmp.eq.f32.partialorder %v1675_v48, 0.0 }
 0x14d   : > { %v433_v50 = vmul.f32 0.5, %v432_v46  ;;  %v419_v63 = vmul.f32 0.020408163, %v405_v52  ;;  %v421_v24 = vmul.f32 0.020408163, %v411_v13 }
 0x14e   : > { %v457_v53 = vmul.f32 0.5, %v456_v47 }
 0x14f   : > { %v1133_v54 = vpop.eup %1132  ;;  %v434_v55 = vsub.f32 1.5, %v433_v50  ;;  %v1703_v11 = vadd.f32 1e-05, %v419_v63  ;;  %v1715_v31 = vadd.f32 1e-05, %v421_v24  ;;  %v488_v50 = vand.u32 2147483648, %v1664_v38 }
 0x150   : > { %v1686_v57 = vpop.eup %1134  ;;  %v458_v58 = vsub.f32 1.5, %v457_v53  ;;  %v479_v61 = vmul.f32 %v1133_v54, %v1664_v38  ;;  %v906_v24 = vunpack.c.h.bf16 %v1678_v49  ;;  %v922_v49 = vunpack.c.h.bf16 %v1711_v25 }
 0x151   : > { %v1137_v62 = vpop.eup %1136  ;;  %v435_v0 = vmul.f32 %v1129_v40, %v434_v55  ;;  %v503_v1 = vmul.f32 %v1686_v57, %v1666_v39  ;;  %1140 = vrsqrt.f32 %v1703_v11  ;;  %vm497_vm14 = vcmp.eq.f32.partialorder %v1703_v11, inf }
 0x152   : > { %v459_v2 = vmul.f32 %v1131_v42, %v458_v58  ;;  %v480_v4 = vmul.f32 %v1133_v54, %v479_v61  ;;  %v443_v5 = vmul.f32 %v1137_v62, %v1668_v41  ;;  %v1139_v19 = vpop.eup %1138  ;;  %1142 = vrsqrt.f32 %v1715_v31 }
 0x153   : > { %v436_v7 = vmul.f32 %v435_v0, %v1658_v29  ;;  %v504_v14 = vmul.f32 %v1686_v57, %v503_v1  ;;  %v909_v58 = vunpack.c.l.bf16 %v1727_v45  ;;  %v512_v1 = vand.u32 2147483648, %v1666_v39 }
 0x154   : > { %v460_v8 = vmul.f32 %v459_v2, %v1660_v30  ;;  %v481_v10 = vmul.f32 0.5, %v480_v4  ;;  %v444_v15 = vmul.f32 %v1137_v62, %v443_v5  ;;  %v1743_v2 = vld [vmem:[%s1626_s21 + $0x38] sm:$0xff]   ;;  %vm499_vm15 = vcmp.eq.f32.partialorder %v1703_v11, 0.0 }
 0x155   : > { %v438_v12 = vsel %vm437_vm3, %v1658_v29, %v436_v7  ;;  %v505_v27 = vmul.f32 0.5, %v504_v14  ;;  %v467_v29 = vmul.f32 %v1139_v19, %v1675_v48  ;;  %v1749_v5 = vld [vmem:[%s1626_s21 + $0x18] sm:$0xff]   ;;  %vm521_vm0 = vcmp.eq.f32.partialorder %v1715_v31, inf }
 0x156   : > { %v462_v16 = vsel %vm461_vm2, %v1660_v30, %v460_v8  ;;  %v441_v17 = vsel %vm439_vm4, %v440_v9, %v438_v12  ;;  %v482_v18 = vsub.f32 1.5, %v481_v10  ;;  %v445_v28 = vmul.f32 0.5, %v444_v15 }
 0x157   : > { %v465_v20 = vsel %vm463_vm5, %v464_v6, %v462_v16  ;;  %v642_v21 = vmul.f32 %v917_v60, %v441_v17  ;;  %v585_v22 = vmul.f32 %v901_v3, %v441_v17  ;;  %v921_v30 = vunpack.c.l.bf16 %v1711_v25  ;;  %v1718_v36 = vpop.eup %1140 }
 0x158   : > { %v587_v23 = vmul.f32 %v905_v59, %v465_v20  ;;  %v483_v26 = vmul.f32 %v1133_v54, %v482_v18  ;;  %v506_v33 = vsub.f32 1.5, %v505_v27  ;;  %v446_v34 = vsub.f32 1.5, %v445_v28 }
 0x159   : > { %650 = vadd.xlane.f32.xlu1 %v642_v21  ;;  %593 = vadd.xlane.f32.xlu0 %v585_v22  ;;  %v468_v35 = vmul.f32 %v1139_v19, %v467_v29  ;;  %v528_v37 = vmul.f32 %v465_v20, %v465_v20  ;;  %v526_v40 = vmul.f32 %v441_v17, %v441_v17  ;;  %v925_v54 = vunpack.c.l.bf16 %v1722_v43 }
 0x15a   : > { %597 = vadd.xlane.f32.xlu2 %v587_v23  ;;  %v484_v32 = vmul.f32 %v483_v26, %v1664_v38  ;;  %v644_v42 = vmul.f32 %v921_v30, %v465_v20  ;;  %v507_v46 = vmul.f32 %v1686_v57, %v506_v33  ;;  %v447_v47 = vmul.f32 %v1137_v62, %v446_v34  ;;  %v1143_v62 = vpop.eup %1142 }
 0x15b   : > { %v469_v52 = vmul.f32 0.5, %v468_v35  ;;  %v491_v53 = vmul.f32 %v1718_v36, %v1703_v11  ;;  %v452_v3 = vand.u32 2147483648, %v1668_v41  ;;  %v515_v9 = vmul.f32 %v1143_v62, %v1715_v31 }
 0x15c   : > { %v486_v44 = vsel %vm485_vm6, %v1664_v38, %v484_v32  ;;  %v508_v59 = vmul.f32 %v507_v46, %v1666_v39  ;;  %v448_v57 = vmul.f32 %v447_v47, %v1668_v41  ;;  %v929_v10 = vunpack.c.l.bf16 %v1743_v2 }
 0x15d   : > { %v489_v55 = vsel %vm487_vm7, %v488_v50, %v486_v44  ;;  %v470_v60 = vsub.f32 1.5, %v469_v52  ;;  %v492_v61 = vmul.f32 %v1718_v36, %v491_v53  ;;  %v918_v12 = vunpack.c.h.bf16 %v1681_v51 }
 0x15e   : > { %v530_v63 = vmul.f32 %v489_v55, %v489_v55  ;;  %v646_v38 = vmul.f32 %v925_v54, %v489_v55  ;;  %v589_v0 = vmul.f32 %v909_v58, %v489_v55  ;;  %v510_v4 = vsel %vm509_vm8, %v1666_v39, %v508_v59 }
 0x15f   : > { %v450_v6 = vsel %vm449_vm9, %v1668_v41, %v448_v57  ;;  %v471_v7 = vmul.f32 %v1139_v19, %v470_v60  ;;  %v493_v8 = vmul.f32 0.5, %v492_v61  ;;  %v513_v13 = vsel %vm511_vm10, %v512_v1, %v510_v4 }
 0x160   : > { %v913_v14 = vunpack.c.l.bf16 %v1749_v5  ;;  %v453_v15 = vsel %vm451_vm11, %v452_v3, %v450_v6  ;;  %v516_v17 = vmul.f32 %v1143_v62, %v515_v9  ;;  %v648_v18 = vmul.f32 %v929_v10, %v513_v13 }
 0x161   : > { %538 = vadd.xlane.f32.xlu1 %v528_v37  ;;  %534 = vadd.xlane.f32.xlu0 %v526_v40  ;;  %v472_v39 = vmul.f32 %v471_v7, %v1675_v48  ;;  %v494_v16 = vsub.f32 1.5, %v493_v8  ;;  %v643_v20 = vmul.f32 %v918_v12, %v453_v15  ;;  %v476_v21 = vand.u32 2147483648, %v1675_v48 }
 0x162   : > { %654 = vadd.xlane.f32.xlu2 %v644_v42  ;;  %v591_v19 = vmul.f32 %v913_v14, %v513_v13  ;;  %v517_v22 = vmul.f32 0.5, %v516_v17  ;;  %v902_v23 = vunpack.c.h.bf16 %v1684_v56  ;;  %v527_v30 = vmul.f32 %v453_v15, %v453_v15 }
 0x163   : > { %v474_v41 = vsel %vm473_vm12, %v1675_v48, %v472_v39  ;;  %v495_v51 = vmul.f32 %v1718_v36, %v494_v16  ;;  %v500_v48 = vand.u32 2147483648, %v1703_v11  ;;  %v910_v34 = vunpack.c.h.bf16 %v1727_v45 }
 0x164   : > { %v477_v26 = vsel %vm475_vm13, %v476_v21, %v474_v41  ;;  %v518_v28 = vsub.f32 1.5, %v517_v22  ;;  %v586_v29 = vmul.f32 %v902_v23, %v453_v15  ;;  %v524_v44 = vand.u32 2147483648, %v1715_v31 }
 0x165   : > { %v496_v27 = vmul.f32 %v495_v51, %v1703_v11  ;;  %v588_v32 = vmul.f32 %v906_v24, %v477_v26  ;;  %v645_v37 = vmul.f32 %v922_v49, %v477_v26  ;;  %v529_v40 = vmul.f32 %v477_v26, %v477_v26 }
 0x166   : > { %v519_v56 = vmul.f32 %v1143_v62, %v518_v28  ;;  %vm523_vm1 = vcmp.eq.f32.partialorder %v1715_v31, 0.0  ;;  %v926_v25 = vunpack.c.h.bf16 %v1722_v43  ;;  %v914_v45 = vunpack.c.h.bf16 %v1749_v5 }
 0x167   : > { %v498_v33 = vsel %vm497_vm14, %v1703_v11, %v496_v27  ;;  %v930_v53 = vunpack.c.h.bf16 %v1743_v2  ;;  %v532_v55 = vmul.f32 %v513_v13, %v513_v13  ;;  %vm565_vm4 = vcmask 0  }
 0x168   : > { %v501_v35 = vsel %vm499_vm15, %v500_v48, %v498_v33  ;;  %v520_v36 = vmul.f32 %v519_v56, %v1715_v31  ;;  %vm684_vm5 = vcmask 8192  }
 0x169   : > { %542 = vadd.xlane.f32.xlu1 %v530_v63  ;;  %658 = vadd.xlane.f32.xlu0 %v646_v38  ;;  %v590_v42 = vmul.f32 %v910_v34, %v501_v35  ;;  %v647_v47 = vmul.f32 %v926_v25, %v501_v35  ;;  %v531_v50 = vmul.f32 %v501_v35, %v501_v35 }
 0x16a   : > { %601 = vadd.xlane.f32.xlu2 %v589_v0  ;;  %v522_v11 = vsel %vm521_vm0, %v1715_v31, %v520_v36 }
 0x16b   : > { %v525_v46 = vsel %vm523_vm1, %v524_v44, %v522_v11 }
 0x16c   : > { %v592_v52 = vmul.f32 %v914_v45, %v525_v46  ;;  %v649_v54 = vmul.f32 %v930_v53, %v525_v46  ;;  %v533_v58 = vmul.f32 %v525_v46, %v525_v46 }
 0x171   : > { %662 = vadd.xlane.f32.xlu0 %v648_v18  ;;  %652 = vadd.xlane.f32.xlu1 %v643_v20 }
 0x172   : > { %605 = vadd.xlane.f32.xlu2 %v591_v19 }
 0x179   : > { %595 = vadd.xlane.f32.xlu0 %v586_v29  ;;  %536 = vadd.xlane.f32.xlu1 %v527_v30 }
 0x17a   : > { %599 = vadd.xlane.f32.xlu2 %v588_v32 }
 0x181   : > { %656 = vadd.xlane.f32.xlu0 %v645_v37  ;;  %540 = vadd.xlane.f32.xlu1 %v529_v40  ;;  %v567_v40 = vlaneseq }
 0x182   : > { %603 = vadd.xlane.f32.xlu2 %v590_v42 }
 0x183   : > { %v568_v46 = vand.u32 127, %v567_v40 }
 0x185   : > { %vm622_vm2 = vcmp.eq.s32.totalorder %v568_v46, 0  ;;  %vm679_vm3 = vcmp.eq.s32.totalorder %v568_v46, 1 }
 0x189   : > { %660 = vadd.xlane.f32.xlu0 %v647_v47  ;;  %544 = vadd.xlane.f32.xlu1 %v531_v50 }
 0x18a   : > { %607 = vadd.xlane.f32.xlu2 %v592_v52 }
 0x191   : > { %664 = vadd.xlane.f32.xlu0 %v649_v54  ;;  %546 = vadd.xlane.f32.xlu1 %v532_v55 }
 0x192   : > { %548 = vadd.xlane.f32.xlu2 %v533_v58 }
 0x1cc   : > { %v651_v31 = vpop.xlane.xlu1 %650  ;;  %v594_v59 = vpop.xlane.xlu0 %593 }
 0x1cd   : > { %v598_v43 = vpop.xlane.xlu2 %597 }
 0x1d4   : > { %v539_v57 = vpop.xlane.xlu1 %538  ;;  %v535_v60 = vpop.xlane.xlu0 %534 }
 0x1d5   : > { %v655_v61 = vpop.xlane.xlu2 %654 }
 0x1dc   : > { %v543_v62 = vpop.xlane.xlu1 %542  ;;  %v659_v63 = vpop.xlane.xlu0 %658 }
 0x1dd   : > { %v602_v38 = vpop.xlane.xlu2 %601 }
 0x1e4   : > { %v663_v0 = vpop.xlane.xlu0 %662  ;;  %v653_v1 = vpop.xlane.xlu1 %652 }
 0x1e5   : > { %v606_v3 = vpop.xlane.xlu2 %605  ;;  %v666_v9 = vadd.f32 %v653_v1, %v651_v31  ;;  %v550_v31 = vld [vmem:[#allocation3] sm:$0x1] }
 0x1e7   : > { %v667_v39 = vadd.f32 %v666_v9, %v655_v61 }
 0x1ec   : > { %v596_v4 = vpop.xlane.xlu0 %595  ;;  %v537_v2 = vpop.xlane.xlu1 %536 }
 0x1ed   : > { %v600_v5 = vpop.xlane.xlu2 %599  ;;  %v609_v6 = vadd.f32 %v596_v4, %v594_v59  ;;  %v551_v15 = vadd.f32 %v537_v2, %v535_v60 }
 0x1ef   : > { %v610_v7 = vadd.f32 %v609_v6, %v598_v43  ;;  %v552_v18 = vadd.f32 %v551_v15, %v539_v57  ;;  %v682_v43 = vld [vmem:[#allocation2] sm:$0x1] }
 0x1f1   : > { %v611_v8 = vadd.f32 %v610_v7, %v600_v5 }
 0x1f3   : > { %v612_v10 = vadd.f32 %v611_v8, %v602_v38 }
 0x1f4   : > { %v657_v12 = vpop.xlane.xlu0 %656  ;;  %v541_v13 = vpop.xlane.xlu1 %540 }
 0x1f5   : > { %v604_v14 = vpop.xlane.xlu2 %603  ;;  %v668_v17 = vadd.f32 %v667_v39, %v657_v12  ;;  %v553_v41 = vadd.f32 %v552_v18, %v541_v13 }
 0x1f6   : > { %v613_v16 = vadd.f32 %v612_v10, %v604_v14 }
 0x1f7   : > { %v669_v22 = vadd.f32 %v668_v17, %v659_v63  ;;  %v554_v27 = vadd.f32 %v553_v41, %v543_v62 }
 0x1f8   : > { %v614_v20 = vadd.f32 %v613_v16, %v606_v3 }
 0x1fc   : > { %v661_v19 = vpop.xlane.xlu0 %660  ;;  %v545_v21 = vpop.xlane.xlu1 %544 }
 0x1fd   : > { %v608_v51 = vpop.xlane.xlu2 %607  ;;  %v670_v24 = vadd.f32 %v669_v22, %v661_v19  ;;  %v555_v29 = vadd.f32 %v554_v27, %v545_v21 }
 0x1fe   : > { %v615_v23 = vadd.f32 %v614_v20, %v608_v51 }
 0x1ff   : > { %v671_v30 = vadd.f32 %v670_v24, %v663_v0 }
 0x200   : > { %v616_v26 = vrot.slane %v615_v23, 4 }
 0x202   : > { %v617_v28 = vadd.f32 %v616_v26, %v615_v23 }
 0x204   : > { %v618_v32 = vrot.slane %v617_v28, 2  ;;  %v665_v48 = vpop.xlane.xlu0 %664  ;;  %v547_v33 = vpop.xlane.xlu1 %546 }
 0x205   : > { %v672_v56 = vadd.f32 %v671_v30, %v665_v48  ;;  %v556_v49 = vadd.f32 %v555_v29, %v547_v33  ;;  %v549_v34 = vpop.xlane.xlu2 %548 }
 0x206   : > { %v619_v35 = vadd.f32 %v618_v32, %v617_v28 }
 0x207   : > { %v673_v36 = vrot.slane %v672_v56, 4  ;;  %v557_v37 = vadd.f32 %v556_v49, %v549_v34 }
 0x208   : > { %v620_v11 = vrot.slane %v619_v35, 1 }
 0x209   : > { %v674_v42 = vadd.f32 %v673_v36, %v672_v56  ;;  %v558_v44 = vrot.slane %v557_v37, 4 }
 0x20a   : > { %v621_v52 = vadd.f32 %v620_v11, %v619_v35 }
 0x20b   : > { %v675_v25 = vrot.slane %v674_v42, 2  ;;  %v559_v45 = vadd.f32 %v558_v44, %v557_v37 }
 0x20c   : > { %v623_v59 = vsel %vm622_vm2, %v621_v52, 0.0 }
 0x20d   : > { %v676_v47 = vadd.f32 %v675_v25, %v674_v42  ;;  %v560_v50 = vrot.slane %v559_v45, 2 }
 0x20f   : > { %v677_v53 = vrot.slane %v676_v47, 1  ;;  %v561_v54 = vadd.f32 %v560_v50, %v559_v45 }
 0x211   : > { %v678_v55 = vadd.f32 %v677_v53, %v676_v47  ;;  %v562_v58 = vrot.slane %v561_v54, 1 }
 0x213   : > { %v680_v57 = vsel %vm679_vm3, %v678_v55, 0.0  ;;  %v563_v60 = vadd.f32 %v562_v58, %v561_v54 }
 0x214   : > { %v681_v61 = vadd.f32 %v680_v57, %v623_v59  ;;  %689 = sbr.rel (%p894_p8) target bundleno = 705 (0x2c1), region = 56 }
 0x215   : > { %v564_v62 = vadd.f32 %v563_v60, %v550_v31 }
 0x216   : > { %v683_v63 = vadd.f32 %v682_v43, %v681_v61 }
 0x217   : > { %566 = vst.msk [vmem:[#allocation3] sm:$0x1] %vm565_vm4, %v564_v62 }
 0x218   : > { %685 = vst.msk [vmem:[#allocation2] sm:$0x1] %vm684_vm5, %v683_v63 }
 0x219   : > { %v1370_v0 = vmov 0   ;;  %v726_v22 = vld [vmem:[%s1923_s4] sm:$0x1] }
 0x21a   : > { %1144 = vset.pattern.permute.xlu0 %v1370_v0 }
 0x21e   : > { %v690_v38 = vld [vmem:[#allocation3] sm:$0x1] }
 0x21f   : > { %1145 = vrsqrt.f32 %v690_v38  ;;  %vm698_vm6 = vcmp.eq.f32.partialorder %v690_v38, inf  ;;  %v701_v7 = vand.u32 2147483648, %v690_v38  ;;  %vm700_vm7 = vcmp.eq.f32.partialorder %v690_v38, 0.0  ;;  %v704_v21 = vld [vmem:[#allocation2] sm:$0x1] }
 0x225   : > { %v1146_v1 = vpop.eup %1145 }
 0x226   : > { %v692_v3 = vmul.f32 %v1146_v1, %v690_v38 }
 0x228   : > { %v693_v4 = vmul.f32 %v1146_v1, %v692_v3 }
 0x22a   : > { %v694_v2 = vmul.f32 0.5, %v693_v4 }
 0x22c   : > { %v695_v5 = vsub.f32 1.5, %v694_v2 }
 0x22e   : > { %v696_v6 = vmul.f32 %v1146_v1, %v695_v5 }
 0x230   : > { %v697_v8 = vmul.f32 %v696_v6, %v690_v38 }
 0x232   : > { %v699_v9 = vsel %vm698_vm6, %v690_v38, %v697_v8 }
 0x233   : > { %v702_v10 = vsel %vm700_vm7, %v701_v7, %v699_v9 }
 0x234   : > { %v703_v12 = vmax.f32 %v702_v10, 1e-12 }
 0x236   : > { %707 = vperm.xlu0 %1144, %v703_v12  }
 0x2a8   : > { %v708_v13 = vpop.permute.xlu0 %707 }
 0x2a9   : > { %v710_v14 = vperm.slane %v708_v13, 0 }
 0x2ab   : > { %1147 = vrcp.f32 %v710_v14  ;;  %v722_v17 = vand.u32 2147483648, %v710_v14  ;;  %v720_v20 = vand.u32 2147483647, %v710_v14  ;;  %vm716_vm9 = vweird.f32 %v710_v14 }
 0x2ad   : > { %v723_v41 = vor.u32 1.1754944e-38, %v722_v17  ;;  %vm721_vm11 = vcmp.eq.f32.partialorder %v720_v20, 8.507059e+37 }
 0x2b1   : > { %v1148_v15 = vpop.eup %1147 }
 0x2b2   : > { %v712_v39 = vmul.f32 %v1148_v15, %v710_v14  ;;  %vm717_vm8 = vweird.f32 %v1148_v15 }
 0x2b3   : > { %vm718_vm10 = vmor %vm716_vm9, %vm717_vm8 }
 0x2b4   : > { %v713_v16 = vsub.f32 1.0, %v712_v39 }
 0x2b6   : > { %v714_v18 = vmul.f32 %v1148_v15, %v713_v16 }
 0x2b8   : > { %v715_v19 = vadd.f32 %v1148_v15, %v714_v18 }
 0x2ba   : > { %v719_v51 = vsel %vm718_vm10, %v1148_v15, %v715_v19 }
 0x2bb   : > { %v724_v23 = vsel %vm721_vm11, %v723_v41, %v719_v51 }
 0x2bc   : > { %v725_v24 = vmul.f32 %v724_v23, %v704_v21 }
 0x2be   : > { %v727_v26 = vadd.f32 %v726_v22, %v725_v24 }
 0x2c0   : > { %728 = vst.msk [vmem:[%s338_s30] sm:$0x1] %vm684_vm5, %v727_v26 }
 0x2c1 PF: > { %s1924_s19 = sld [smem:[#allocation23_spill]]  ;;  %s740_s29 = sshll.u32 %s338_s30, 4  ;;  %s741_s29 = int_to_ptr.vmem [resolvable:$true] %s740_s29 }
 0x2c2   : > { %s1925_s5 = sld [smem:[#allocation36_spill]]  ;;  %s730_s16 = scalar_lea.sflag [#allocation6], %s1616_s11 }
 0x2c8   : > { %s738_s9 = scalar_lea.hbm %s1925_s5, %s1924_s19  ;;  %s1225_s15 = scalar_lea.hbm %s1925_s5, 2 }
 0x2c9   : > { %s742_s14 = sshll.u32 %s738_s9, 4  ;;  %s743_s14 = int_to_ptr.hbm [resolvable:$true] %s742_s14 }
 0x2ca   : > { %s1219_s6 = sshra.s32 %s743_s14, 4  ;;  %s1220_s6 = int_to_ptr.hbm [resolvable:$true] %s1219_s6 }
 0x2cb   : > { %s1221_s10 = scalar_lea.hbm %s1220_s6, 1  ;;  %p1226_p0 = scmp.lt.s32.totalorder %s1220_s6, %s1925_s5 }
 0x2cc   : > { %p1222_p5 = scmp.ne.s32.totalorder %s1220_s6, %s1221_s10  ;;  %p1227_p2 = scmp.lt.s32.totalorder %s1225_s15, %s1221_s10 }
 0x2ce   : > { %p1223_p10 = pnand %p1222_p5, %p1552_p13  ;;  %p1228_p3 = por %p1227_p2, %p1226_p0 }
 0x2d0   : > { %p1224_p11 = pneg %p1223_p10 }
 0x2d2   : > { %p1229_p6 = pnand %p1228_p3, %p1224_p11 }
 0x2d4   : > { %1232 = shalt.err (!%p1229_p6)
}
 0x2d5   : > { %999 = dma.vmem_to_hbm [thread:$0]  (%p1552_p13), %s741_s29, 16, %s743_s14, %s730_s16  }
 0x2d6 PF: > { %s1927_s11 = sld [smem:[#allocation19_spill]]  ;;  %p1005_p9 = scmp.ge.s32.totalorder %s1359_s28, 2 }
 0x2d8   : > { %p1002_p12 = pnand %p1005_p9, %p1559_p7 }
 0x2da   : > { %p1003_p1 = pneg %p1002_p12 }
 0x2dc   : > { %s754_s13 = sand.u32 1, %s1927_s11  }
 0x2dd   : > { %s755_s7 = scalar_lea.sflag [#allocation6], %s754_s13 }
 0x2de   : > { %1302 = dma.done.wait (%p1003_p1), %s755_s7, 16  }
 0x2df   : > { %1304 = vsyncadd (%p1003_p1), %s755_s7, 4294967280  ;;  %s23_s28 = sadd.s32 1, %s1359_s28   ;;  %s1930_s15 = sld [smem:[#allocation18_spill]] }
 0x2e0   : > { %p1810_p4 = scmp.ge.s32.totalorder %s23_s28, 6   ;;  %s1931_s4 = sld [smem:[#allocation31_spill]] }
 0x2e1   : > { %s1932_s18 = sld [smem:[#allocation20_spill]]  ;;  %s1939_s16 = smov %s1315_s17 }
 0x2e2   : > { %s1933_s23 = sld [smem:[#allocation28_spill]]  ;;  %s1941_s19 = smov %s1327_s20 }
 0x2e3   : > { %s1934_s24 = sld [smem:[#allocation21_spill]]  ;;  %s1943_s21 = smov %s1335_s22 }
 0x2e4   : > { %s1935_s3 = sld [smem:[#allocation29_spill]]  ;;  %s1947_s25 = smov %s1355_s27 }
 0x2e5   : > { %s1936_s9 = sld [smem:[#allocation25_spill]] }
 0x2e6   : > { %s1937_s29 = sld [smem:[#allocation26_spill]]  ;;  %s1940_s17 = smov %s1931_s4 }
 0x2e8   : > { %s1942_s20 = smov %s1933_s23  ;;  %22 = sbr.rel (!%p1810_p4) target bundleno = 15 (0xf), region = 119 }
 0x2e9   : > { %s1944_s22 = smov %s1934_s24  ;;  %s1946_s24 = smov %s1351_s26 }
 0x2ea   : > { %s1945_s23 = smov %s1935_s3 }
 0x2eb   : > { %s1948_s26 = smov %s1936_s9 }
 0x2ec   : > { %s1949_s27 = smov %s1937_s29 }
 0x2ed   :  { %760 = vsyncpa [#allocation5], 1 }
 0x2ee   :  { %762 = vsyncpa [#allocation5 + $0x1], 1 }
 0x2ef   :  { %763 = vsyncpa [#allocation8], 1 }
 0x2f0   :  { %765 = vsyncpa [#allocation8 + $0x1], 1 }
 0x2f1   :  { %766 = vsyncpa [#allocation6], 1 }
 0x2f2   :  { %768 = vsyncpa [#allocation6 + $0x1], 1 }

</bundles_post_ra>
